<compile_context>
chip_gen: v7x
topology: tpu7x:2x2x1
jax: 0.10.0
libtpu: 0.0.40
codegen_flags: <defaults>
</compile_context>

<pallas_src>
import jax
import jax.numpy as jnp
import numpy as np
from jax.experimental import pallas as pl
from jax.experimental.pallas import tpu as pltpu

NEG_SLOPE = 0.01   # nn.LeakyReLU default
BN_EPS = 1e-5      # nn.BatchNorm1d default

# true (unpadded) layer dims
D_IN, D1, D2, D3, D_OUT = 292, 67, 66, 65, 3
LANE = 128  # padded width of every hidden feature dim


def _round_up(x, m):
    return ((x + m - 1) // m) * m


def _pad_to(x, shape):
    pads = [(0, s - d) for d, s in zip(x.shape, shape)]
    return jnp.pad(x, pads)


def _leaky(h):
    return jnp.where(h >= 0, h, NEG_SLOPE * h)


def mlp_kernel(x_ref,
               w1_ref, b1_ref,
               w2_ref,
               w3_ref, b3_ref,
               w4_ref, b4_ref,
               o_ref):
    # Linear(292,67) + bias, LeakyReLU  (Dropout = identity in eval mode).
    # bf16 operands -> MXU, f32 accumulation; elementwise stays f32.
    h = jnp.dot(x_ref[...], w1_ref[...], preferred_element_type=jnp.float32)
    h = _leaky(h + b1_ref[...])

    # Linear(67,66, no bias), LeakyReLU
    h = jnp.dot(h.astype(jnp.bfloat16), w2_ref[...],
                preferred_element_type=jnp.float32)
    h = _leaky(h)

    # BatchNorm1d(66) folded into Linear(66,65): w3' = diag(s2)@w3, b3' = t2@w3
    h = jnp.dot(h.astype(jnp.bfloat16), w3_ref[...],
                preferred_element_type=jnp.float32)
    h = _leaky(h + b3_ref[...])

    # BatchNorm1d(65) folded into Linear(65,3): w4' = diag(s3)@w4, b4' = t3@w4 + b4
    out = jnp.dot(h.astype(jnp.bfloat16), w4_ref[...],
                  preferred_element_type=jnp.float32)
    out = out + b4_ref[...]

    # Emit the real 3-wide output (block last dim == full array dim).
    o_ref[...] = out[:, :D_OUT]


def init_params(key):
    """Deterministic parameter init (PyTorch-like uniform bounds)."""
    ks = jax.random.split(key, 6)

    def lin(k, fan_in, fan_out, bias):
        bound = 1.0 / np.sqrt(fan_in)
        kw, kb = jax.random.split(k)
        w = jax.random.uniform(kw, (fan_in, fan_out), jnp.float32, -bound, bound)
        b = (jax.random.uniform(kb, (fan_out,), jnp.float32, -bound, bound)
             if bias else None)
        return w, b

    w1, b1 = lin(ks[0], D_IN, D1, True)
    w2, _ = lin(ks[1], D1, D2, False)
    w3, _ = lin(ks[2], D2, D3, False)
    w4, b4 = lin(ks[3], D3, D_OUT, True)

    def bn(k, d):
        k1, k2, k3, k4 = jax.random.split(k, 4)
        gamma = 1.0 + 0.1 * jax.random.normal(k1, (d,), jnp.float32)
        beta = 0.1 * jax.random.normal(k2, (d,), jnp.float32)
        mean = 0.1 * jax.random.normal(k3, (d,), jnp.float32)
        var = 1.0 + 0.1 * jax.random.uniform(k4, (d,), jnp.float32)
        return gamma, beta, mean, var

    g2, be2, m2, v2 = bn(ks[4], D2)
    g3, be3, m3, v3 = bn(ks[5], D3)

    return dict(w1=w1, b1=b1, w2=w2, g2=g2, be2=be2, m2=m2, v2=v2,
                w3=w3, g3=g3, be3=be3, m3=m3, v3=v3, w4=w4, b4=b4)


def prepare_params(p):
    """Fold eval-mode BN into the following Linear, pad to 128 lanes, cast
    weight matrices to bf16 (biases stay f32).  Done ONCE, offline."""
    # BN as affine: y = x * s + t, with s = gamma / sqrt(var + eps)
    s2 = p["g2"] / jnp.sqrt(p["v2"] + BN_EPS)
    t2 = p["be2"] - p["m2"] * s2
    s3 = p["g3"] / jnp.sqrt(p["v3"] + BN_EPS)
    t3 = p["be3"] - p["m3"] * s3

    w3f = s2[:, None] * p["w3"]          # (66, 65)
    b3f = t2 @ p["w3"]                   # (65,)
    w4f = s3[:, None] * p["w4"]          # (65, 3)
    b4f = t3 @ p["w4"] + p["b4"]         # (3,)

    def wpad(w, shape):
        return _pad_to(w, shape).astype(jnp.bfloat16)

    def bpad(b):
        return _pad_to(b[None, :], (1, LANE)).astype(jnp.float32)

    return dict(
        w1=wpad(p["w1"], (D_IN, LANE)),   # (292, 128) bf16
        b1=bpad(p["b1"]),                 # (1, 128)   f32
        w2=wpad(p["w2"], (LANE, LANE)),   # (128, 128) bf16
        w3=wpad(w3f, (LANE, LANE)),       # (128, 128) bf16
        b3=bpad(b3f),                     # (1, 128)   f32
        w4=wpad(w4f, (LANE, LANE)),       # (128, 128) bf16
        b4=bpad(b4f),                     # (1, 128)   f32
    )


def prop_pred_forward(x, pp, tile_n=1024):
    """Fused Pallas forward. x: (N, 292) -> (N, 3) float32.

    pp: output of prepare_params (pre-padded / BN-folded bf16 weights).
    """
    N = x.shape[0]
    # bf16 input stream for the x DMA (ideally x is already stored bf16 upstream)
    x = x.astype(jnp.bfloat16)

    tile_n = min(tile_n, N)
    # Keep the batch grid at >= 2 steps whenever possible so the "parallel"
    # grid axis can shard across v7x's 2 TensorCores (free on v5e/v6e).
    if N >= 16:
        tile_n = min(tile_n, _round_up(pl.cdiv(N, 2), 8))
    grid = (pl.cdiv(N, tile_n),)

    def const_spec(arr):
        # Whole array as one block, same block every grid step -> DMA'd once,
        # stays VMEM-resident; single-buffered since the index never changes.
        return pl.BlockSpec(arr.shape, lambda i: (0, 0),
                            pipeline_mode=pl.Buffered(1))

    in_specs = [
        pl.BlockSpec((tile_n, D_IN), lambda i: (i, 0)),   # x: unpadded features
        const_spec(pp["w1"]), const_spec(pp["b1"]),
        const_spec(pp["w2"]),
        const_spec(pp["w3"]), const_spec(pp["b3"]),
        const_spec(pp["w4"]), const_spec(pp["b4"]),
    ]
    out_spec = pl.BlockSpec((tile_n, D_OUT), lambda i: (i, 0))

    return pl.pallas_call(
        mlp_kernel,
        out_shape=jax.ShapeDtypeStruct((N, D_OUT), jnp.float32),
        grid=grid,
        in_specs=in_specs,
        out_specs=out_spec,
        compiler_params=pltpu.CompilerParams(
            dimension_semantics=("parallel",),   # megacore-shard batch on v7x
        ),
    )(x, pp["w1"], pp["b1"], pp["w2"], pp["w3"], pp["b3"], pp["w4"], pp["b4"])


def prop_pred_reference(x, p):
    """Pure-JAX f32 reference of the same eval-mode forward (unfolded BN)."""
    h = _leaky(x @ p["w1"] + p["b1"])
    h = _leaky(h @ p["w2"])
    h = (h - p["m2"]) / jnp.sqrt(p["v2"] + BN_EPS) * p["g2"] + p["be2"]
    h = _leaky(h @ p["w3"])
    h = (h - p["m3"]) / jnp.sqrt(p["v3"] + BN_EPS) * p["g3"] + p["be3"]
    return h @ p["w4"] + p["b4"]


if __name__ == "__main__":
    key = jax.random.PRNGKey(0)
    kx, kp = jax.random.split(key)

    N = 64
    x = jax.random.normal(kx, (N, D_IN), jnp.float32)
    params = init_params(kp)
    prepped = prepare_params(params)   # pad/fold/cast once, outside the forward

    # small tile to exercise the batch grid / pipelining (grid = 4)
    out = prop_pred_forward(x, prepped, tile_n=16)
    out = jax.block_until_ready(out)

    # default-tile path (exercises the >=2-step megacore cap: grid = 2)
    out_default = prop_pred_forward(x, prepped)
    out_default = jax.block_until_ready(out_default)

    ref = prop_pred_reference(x, params)
    assert out.shape == (N, D_OUT)
    assert out_default.shape == (N, D_OUT)
    # bf16 matmul path vs f32 reference -> loosened tolerance
    np.testing.assert_allclose(np.asarray(out), np.asarray(ref),
                               rtol=5e-2, atol=5e-2)
    np.testing.assert_allclose(np.asarray(out_default), np.asarray(ref),
                               rtol=5e-2, atol=5e-2)

    print("KERNEL_OK")
</pallas_src>

<mosaic_0001>
module attributes {stable_mosaic.version = 11 : i64} {
  func.func @mlp_kernel(%arg0: i32, %arg1: memref<16x292xbf16, #tpu.memory_space<vmem>>, %arg2: memref<292x128xbf16, #tpu.memory_space<vmem>>, %arg3: memref<1x128xf32, #tpu.memory_space<vmem>>, %arg4: memref<128x128xbf16, #tpu.memory_space<vmem>>, %arg5: memref<128x128xbf16, #tpu.memory_space<vmem>>, %arg6: memref<1x128xf32, #tpu.memory_space<vmem>>, %arg7: memref<128x128xbf16, #tpu.memory_space<vmem>>, %arg8: memref<1x128xf32, #tpu.memory_space<vmem>>, %arg9: memref<16x3xf32, #tpu.memory_space<vmem>>) attributes {dimension_semantics = [#tpu.dimension_semantics<parallel>], iteration_bounds = array<i64: 4>, scalar_prefetch = 0 : i64, scratch_operands = 0 : i64, tpu.core_type = #tpu.core_type<tc>, window_params = [{transform_indices = @transform_0, window_bounds = array<i64: 16, 292>}, {pipeline_mode = #tpu.pipeline_mode<synchronous>, transform_indices = @transform_1, window_bounds = array<i64: 292, 128>}, {pipeline_mode = #tpu.pipeline_mode<synchronous>, transform_indices = @transform_2, window_bounds = array<i64: 1, 128>}, {pipeline_mode = #tpu.pipeline_mode<synchronous>, transform_indices = @transform_3, window_bounds = array<i64: 128, 128>}, {pipeline_mode = #tpu.pipeline_mode<synchronous>, transform_indices = @transform_4, window_bounds = array<i64: 128, 128>}, {pipeline_mode = #tpu.pipeline_mode<synchronous>, transform_indices = @transform_5, window_bounds = array<i64: 1, 128>}, {pipeline_mode = #tpu.pipeline_mode<synchronous>, transform_indices = @transform_6, window_bounds = array<i64: 128, 128>}, {pipeline_mode = #tpu.pipeline_mode<synchronous>, transform_indices = @transform_7, window_bounds = array<i64: 1, 128>}, {transform_indices = @transform_8, window_bounds = array<i64: 16, 3>}]} {
    %c0 = arith.constant 0 : index
    %c0_0 = arith.constant 0 : index
    %0 = vector.load %arg1[%c0, %c0_0] : memref<16x292xbf16, #tpu.memory_space<vmem>>, vector<16x292xbf16>
    %c0_1 = arith.constant 0 : index
    %c0_2 = arith.constant 0 : index
    %1 = vector.load %arg2[%c0_1, %c0_2] : memref<292x128xbf16, #tpu.memory_space<vmem>>, vector<292x128xbf16>
    %cst = arith.constant dense<0.000000e+00> : vector<16x128xf32>
    %2 = tpu.matmul %0, %1, %cst {dimension_numbers = #tpu.dot_dimension_numbers<[1], [0], [0], [1], [0, 0, 1, 1], [], []>} : vector<16x292xbf16>, vector<292x128xbf16>, vector<16x128xf32> -> vector<16x128xf32>
    %c0_3 = arith.constant 0 : index
    %c0_4 = arith.constant 0 : index
    %3 = vector.load %arg3[%c0_3, %c0_4] : memref<1x128xf32, #tpu.memory_space<vmem>>, vector<1x128xf32>
    %4 = vector.broadcast %3 : vector<1x128xf32> to vector<16x128xf32>
    %5 = arith.addf %2, %4 : vector<16x128xf32>
    %cst_5 = arith.constant 0.000000e+00 : f32
    %6 = vector.broadcast %cst_5 : f32 to vector<16x128xf32>
    %7 = arith.cmpf oge, %5, %6 : vector<16x128xf32>
    %cst_6 = arith.constant 0.00999999977 : f32
    %8 = vector.broadcast %cst_6 : f32 to vector<16x128xf32>
    %9 = arith.mulf %8, %5 : vector<16x128xf32>
    %10 = arith.select %7, %5, %9 : vector<16x128xi1>, vector<16x128xf32>
    %11 = arith.truncf %10 : vector<16x128xf32> to vector<16x128xbf16>
    %c0_7 = arith.constant 0 : index
    %c0_8 = arith.constant 0 : index
    %12 = vector.load %arg4[%c0_7, %c0_8] : memref<128x128xbf16, #tpu.memory_space<vmem>>, vector<128x128xbf16>
    %cst_9 = arith.constant dense<0.000000e+00> : vector<16x128xf32>
    %13 = tpu.matmul %11, %12, %cst_9 {dimension_numbers = #tpu.dot_dimension_numbers<[1], [0], [0], [1], [0, 0, 1, 1], [], []>} : vector<16x128xbf16>, vector<128x128xbf16>, vector<16x128xf32> -> vector<16x128xf32>
    %cst_10 = arith.constant 0.000000e+00 : f32
    %14 = vector.broadcast %cst_10 : f32 to vector<16x128xf32>
    %15 = arith.cmpf oge, %13, %14 : vector<16x128xf32>
    %cst_11 = arith.constant 0.00999999977 : f32
    %16 = vector.broadcast %cst_11 : f32 to vector<16x128xf32>
    %17 = arith.mulf %16, %13 : vector<16x128xf32>
    %18 = arith.select %15, %13, %17 : vector<16x128xi1>, vector<16x128xf32>
    %19 = arith.truncf %18 : vector<16x128xf32> to vector<16x128xbf16>
    %c0_12 = arith.constant 0 : index
    %c0_13 = arith.constant 0 : index
    %20 = vector.load %arg5[%c0_12, %c0_13] : memref<128x128xbf16, #tpu.memory_space<vmem>>, vector<128x128xbf16>
    %cst_14 = arith.constant dense<0.000000e+00> : vector<16x128xf32>
    %21 = tpu.matmul %19, %20, %cst_14 {dimension_numbers = #tpu.dot_dimension_numbers<[1], [0], [0], [1], [0, 0, 1, 1], [], []>} : vector<16x128xbf16>, vector<128x128xbf16>, vector<16x128xf32> -> vector<16x128xf32>
    %c0_15 = arith.constant 0 : index
    %c0_16 = arith.constant 0 : index
    %22 = vector.load %arg6[%c0_15, %c0_16] : memref<1x128xf32, #tpu.memory_space<vmem>>, vector<1x128xf32>
    %23 = vector.broadcast %22 : vector<1x128xf32> to vector<16x128xf32>
    %24 = arith.addf %21, %23 : vector<16x128xf32>
    %cst_17 = arith.constant 0.000000e+00 : f32
    %25 = vector.broadcast %cst_17 : f32 to vector<16x128xf32>
    %26 = arith.cmpf oge, %24, %25 : vector<16x128xf32>
    %cst_18 = arith.constant 0.00999999977 : f32
    %27 = vector.broadcast %cst_18 : f32 to vector<16x128xf32>
    %28 = arith.mulf %27, %24 : vector<16x128xf32>
    %29 = arith.select %26, %24, %28 : vector<16x128xi1>, vector<16x128xf32>
    %30 = arith.truncf %29 : vector<16x128xf32> to vector<16x128xbf16>
    %c0_19 = arith.constant 0 : index
    %c0_20 = arith.constant 0 : index
    %31 = vector.load %arg7[%c0_19, %c0_20] : memref<128x128xbf16, #tpu.memory_space<vmem>>, vector<128x128xbf16>
    %cst_21 = arith.constant dense<0.000000e+00> : vector<16x128xf32>
    %32 = tpu.matmul %30, %31, %cst_21 {dimension_numbers = #tpu.dot_dimension_numbers<[1], [0], [0], [1], [0, 0, 1, 1], [], []>} : vector<16x128xbf16>, vector<128x128xbf16>, vector<16x128xf32> -> vector<16x128xf32>
    %c0_22 = arith.constant 0 : index
    %c0_23 = arith.constant 0 : index
    %33 = vector.load %arg8[%c0_22, %c0_23] : memref<1x128xf32, #tpu.memory_space<vmem>>, vector<1x128xf32>
    %34 = vector.broadcast %33 : vector<1x128xf32> to vector<16x128xf32>
    %35 = arith.addf %32, %34 : vector<16x128xf32>
    %36 = vector.extract_strided_slice %35 {offsets = [0, 0], sizes = [16, 3], strides = [1, 1]} : vector<16x128xf32> to vector<16x3xf32>
    %c0_24 = arith.constant 0 : index
    %c0_25 = arith.constant 0 : index
    %37 = vector.load %arg9[%c0_24, %c0_25] : memref<16x3xf32, #tpu.memory_space<vmem>>, vector<16x3xf32>
    tpu.vector_store %arg9[%c0_24, %c0_25], %36 {strides = array<i32>} : memref<16x3xf32, #tpu.memory_space<vmem>>, vector<16x3xf32>,
    return
  }
  func.func @transform_0(%arg0: i32) -> (i32, i32) {
    %c0_i32 = arith.constant 0 : i32
    %c0_i32_0 = arith.constant 0 : i32
    return %arg0, %c0_i32 : i32, i32
  }
  func.func @transform_1(%arg0: i32) -> (i32, i32) {
    %c0_i32 = arith.constant 0 : i32
    %c0_i32_0 = arith.constant 0 : i32
    %c0_i32_1 = arith.constant 0 : i32
    return %c0_i32, %c0_i32_0 : i32, i32
  }
  func.func @transform_2(%arg0: i32) -> (i32, i32) {
    %c0_i32 = arith.constant 0 : i32
    %c0_i32_0 = arith.constant 0 : i32
    %c0_i32_1 = arith.constant 0 : i32
    return %c0_i32, %c0_i32_0 : i32, i32
  }
  func.func @transform_3(%arg0: i32) -> (i32, i32) {
    %c0_i32 = arith.constant 0 : i32
    %c0_i32_0 = arith.constant 0 : i32
    %c0_i32_1 = arith.constant 0 : i32
    return %c0_i32, %c0_i32_0 : i32, i32
  }
  func.func @transform_4(%arg0: i32) -> (i32, i32) {
    %c0_i32 = arith.constant 0 : i32
    %c0_i32_0 = arith.constant 0 : i32
    %c0_i32_1 = arith.constant 0 : i32
    return %c0_i32, %c0_i32_0 : i32, i32
  }
  func.func @transform_5(%arg0: i32) -> (i32, i32) {
    %c0_i32 = arith.constant 0 : i32
    %c0_i32_0 = arith.constant 0 : i32
    %c0_i32_1 = arith.constant 0 : i32
    return %c0_i32, %c0_i32_0 : i32, i32
  }
  func.func @transform_6(%arg0: i32) -> (i32, i32) {
    %c0_i32 = arith.constant 0 : i32
    %c0_i32_0 = arith.constant 0 : i32
    %c0_i32_1 = arith.constant 0 : i32
    return %c0_i32, %c0_i32_0 : i32, i32
  }
  func.func @transform_7(%arg0: i32) -> (i32, i32) {
    %c0_i32 = arith.constant 0 : i32
    %c0_i32_0 = arith.constant 0 : i32
    %c0_i32_1 = arith.constant 0 : i32
    return %c0_i32, %c0_i32_0 : i32, i32
  }
  func.func @transform_8(%arg0: i32) -> (i32, i32) {
    %c0_i32 = arith.constant 0 : i32
    %c0_i32_0 = arith.constant 0 : i32
    return %arg0, %c0_i32 : i32, i32
  }
}

</mosaic_0001>

<bundles_post_ra>
// kernel: tpu_custom_call.1
= control target key start
LH: loop header
LB: loop body
LE: loop exit
PB: predicated region body
PF: predicated region fallthrough
CT: control target
= control target key end

     0   :  { %13 = vsyncpa [#allocation3], 0  ;;  %s1970_s0 = inlined_call_operand.hbm [shape: bf16[64,292], index: 0, kind: input, shape index: {}]   ;;  %s1971_s1 = inlined_call_operand.hbm [shape: bf16[292,128], index: 1, kind: input, shape index: {}]   ;;  %s1972_s2 = inlined_call_operand.vmem [shape: f32[1,128], index: 2, kind: input, shape index: {}]   ;;  %s1973_s3 = inlined_call_operand.hbm [shape: bf16[128,128], index: 3, kind: input, shape index: {}]   ;;  %s1974_s4 = inlined_call_operand.hbm [shape: bf16[128,128], index: 4, kind: input, shape index: {}]   ;;  %s1975_s5 = inlined_call_operand.vmem [shape: f32[1,128], index: 5, kind: input, shape index: {}]   ;;  %s1976_s6 = inlined_call_operand.hbm [shape: bf16[128,128], index: 6, kind: input, shape index: {}]   ;;  %s1977_s7 = inlined_call_operand.vmem [shape: f32[1,128], index: 7, kind: input, shape index: {}]   ;;  %s1978_s8 = inlined_call_operand.vmem [shape: f32[64,3], index: 8, kind: output, shape index: {}]  }
   0x1   :  { %15 = vsyncpa [#allocation3 + $0x1], 0 }
   0x2   :  { %16 = vsyncpa [#allocation5], 0 }
   0x3   :  { %17 = vsyncpa [#allocation8], 0  ;;  %s1681_s27 = smov 0   ;;  %s1683_s28 = smov 0  }
   0x4   :  { %s1685_s29 = smov 0   ;;  %s1687_s30 = smov 0  }
   0x5 LB: > { %s1981_s9 = sadd.s32 4294967295, %s1623_s30   ;;  %p43_p0 = scmp.ne.s32.totalorder %s1615_s28, %s1611_s27  ;;  %s1623_s30 = sphi %s1687_s30, %s1997_s30   ;;  %s1619_s29 = sphi %s1685_s29, %s1996_s29   ;;  %s1615_s28 = sphi %s1683_s28, %s1995_s28   ;;  %s1611_s27 = sphi %s1681_s27, %s1994_s27  }
   0x6   : > { %p1703_p1 = scmp.eq.s32.totalorder %s1981_s9, 0  ;;  %p1112_p2 = scmp.ge.s32.totalorder %s1623_s30, 1 }
   0x7   : > { %p227_p3 = scmp.lt.s32.totalorder %s1623_s30, 5  ;;  %s1625_s13 = smov [#allocation4]  }
   0x8   : > { %s1984_s10 = scalar_select %p1703_p1, 1, 0 }
   0x9   : > { %p1711_p4 = por %p1703_p1, %p43_p0  ;;  %p1715_p5 = pnand %p1112_p2, %p227_p3 }
   0xa   : > { %s239_s14 = sshll.u32 %s1625_s13, 4  ;;  %s1626_s16 = smov [#allocation7]   ;;  %s1719_s14 = int_to_ptr.vmem [resolvable:$true] %s239_s14 }
   0xb   : > { %s1985_s11 = scalar_select %p1711_p4, 1, 0 }
   0xc   : > { %s1986_s12 = scalar_select %p1715_p5, 1, 0 }
   0xd   : > { %p1324_p6 = pneg %p1715_p5  ;;  %s268_s17 = sshll.u32 %s1626_s16, 4  ;;  %s1729_s17 = int_to_ptr.vmem [resolvable:$true] %s268_s17 }
   0xe   : > { %s1627_s18 = smov [#allocation6]   ;;  %s1439_s22 = scalar_lea.hbm %s1971_s1, 2368 }
   0xf   : > { %p1725_p7 = pnand %p1324_p6, %p1703_p1  ;;  %s1731_s19 = sshll.u32 %s1627_s18, 4  ;;  %s256_s19 = int_to_ptr.vmem [resolvable:$true] %s1731_s19 }
  0x10   : > { %p1440_p8 = scmp.ne.s32.totalorder %s1971_s1, %s1439_s22  ;;  %p1446_p12 = scmp.lt.u32.totalorder %s1439_s22, %s1971_s1 }
  0x11   : > { %p1741_p9 = pneg %p1725_p7 }
  0x13   : > { %p1442_p10 = pnand %p1741_p9, %p1440_p8 }
  0x15   : > { %p1443_p11 = pneg %p1442_p10 }
  0x17   : > { %p1448_p13 = pnand %p1446_p12, %p1443_p11 }
  0x19   : > { %1451 = shalt.err (!%p1448_p13)
}
  0x1a   : > { %s1452_s13 = scalar_lea.vmem %s1719_s14, 2368  ;;  %p1460_p6 = scmp.lt.s32.totalorder %s1719_s14, %s1719_s14 }
  0x1b   : > { %p1453_p0 = scmp.ne.s32.totalorder %s1719_s14, %s1452_s13  ;;  %p1461_p1 = scmp.lt.s32.totalorder %s1452_s13, %s1452_s13 }
  0x1d   : > { %p1455_p2 = pnand %p1453_p0, %p1741_p9  ;;  %p1462_p8 = por %p1461_p1, %p1460_p6 }
  0x1f   : > { %p1456_p3 = pneg %p1455_p2 }
  0x21   : > { %p1463_p10 = pnand %p1462_p8, %p1456_p3 }
  0x23   : > { %1466 = shalt.err (!%p1463_p10)
}
  0x24   : > { %s1628_s16 = smov 64   ;;  %s1629_s18 = smov 4  }
  0x25   : > { %1327 = dma.hbm_to_vmem [thread:$0]  (!%p1725_p7), %s1971_s1, 2368, %s1719_s14, [#allocation5], %s1628_s16, %s1628_s16, %s1629_s18  }
  0x26   : > { %s1467_s24 = scalar_lea.hbm %s1974_s4, 1024 }
  0x27   : > { %p1468_p1 = scmp.ne.s32.totalorder %s1974_s4, %s1467_s24  ;;  %p1474_p13 = scmp.lt.u32.totalorder %s1467_s24, %s1974_s4 }
  0x29   : > { %p1470_p11 = pnand %p1468_p1, %p1741_p9 }
  0x2b   : > { %p1471_p12 = pneg %p1470_p11 }
  0x2d   : > { %p1476_p0 = pnand %p1474_p13, %p1471_p12 }
  0x2f   : > { %1479 = shalt.err (!%p1476_p0)
}
  0x30   : > { %s1480_s14 = scalar_lea.vmem %s1729_s17, 1024  ;;  %p1488_p8 = scmp.lt.s32.totalorder %s1729_s17, %s1729_s17 }
  0x31   : > { %p1481_p2 = scmp.ne.s32.totalorder %s1729_s17, %s1480_s14  ;;  %p1489_p10 = scmp.lt.s32.totalorder %s1480_s14, %s1480_s14 }
  0x33   : > { %p1483_p3 = pnand %p1481_p2, %p1741_p9  ;;  %p1490_p1 = por %p1489_p10, %p1488_p8 }
  0x35   : > { %p1484_p6 = pneg %p1483_p3 }
  0x37   : > { %p1491_p11 = pnand %p1490_p1, %p1484_p6 }
  0x39   : > { %1494 = shalt.err (!%p1491_p11)
}
  0x3a   : > { %1333 = dma.hbm_to_vmem [thread:$0]  (!%p1725_p7), %s1974_s4, 1024, %s1729_s17, [#allocation8], %s1628_s16, %s1628_s16, %s1629_s18  }
  0x3b   : > { %s1495_s23 = scalar_lea.hbm %s1973_s3, 1024 }
  0x3c   : > { %p1496_p12 = scmp.ne.s32.totalorder %s1973_s3, %s1495_s23  ;;  %p1502_p2 = scmp.lt.u32.totalorder %s1495_s23, %s1973_s3 }
  0x3e   : > { %p1498_p13 = pnand %p1496_p12, %p1741_p9 }
  0x40   : > { %p1499_p0 = pneg %p1498_p13 }
  0x42   : > { %p1504_p3 = pnand %p1502_p2, %p1499_p0 }
  0x44   : > { %1507 = shalt.err (!%p1504_p3)
}
  0x45   : > { %s1508_s14 = scalar_lea.vmem %s256_s19, 1024  ;;  %p1516_p1 = scmp.lt.s32.totalorder %s256_s19, %s256_s19 }
  0x46   : > { %p1509_p6 = scmp.ne.s32.totalorder %s256_s19, %s1508_s14  ;;  %p1517_p11 = scmp.lt.s32.totalorder %s1508_s14, %s1508_s14 }
  0x48   : > { %p1511_p8 = pnand %p1509_p6, %p1741_p9  ;;  %p1518_p4 = por %p1517_p11, %p1516_p1 }
  0x4a   : > { %p1512_p10 = pneg %p1511_p8 }
  0x4c   : > { %p1519_p5 = pnand %p1518_p4, %p1512_p10 }
  0x4e   : > { %1522 = shalt.err (!%p1519_p5)
}
  0x4f   : > { %1330 = dma.hbm_to_vmem [thread:$0]  (!%p1725_p7), %s1973_s3, 1024, %s256_s19, [#allocation5], %s1628_s16, %s1628_s16, %s1629_s18  }
  0x50   : > { %s1630_s20 = smov [#allocation9]   ;;  %s1523_s24 = scalar_lea.hbm %s1976_s6, 1024 }
  0x51   : > { %s284_s21 = sshll.u32 %s1630_s20, 4  ;;  %p1524_p4 = scmp.ne.s32.totalorder %s1976_s6, %s1523_s24  ;;  %s285_s21 = int_to_ptr.vmem [resolvable:$true] %s284_s21 }
  0x52   : > { %p1530_p13 = scmp.lt.u32.totalorder %s1523_s24, %s1976_s6 }
  0x53   : > { %p1526_p5 = pnand %p1524_p4, %p1741_p9 }
  0x55   : > { %p1527_p12 = pneg %p1526_p5 }
  0x57   : > { %p1532_p0 = pnand %p1530_p13, %p1527_p12 }
  0x59   : > { %1535 = shalt.err (!%p1532_p0)
}
  0x5a   : > { %s1536_s19 = scalar_lea.vmem %s285_s21, 1024  ;;  %p1544_p8 = scmp.lt.s32.totalorder %s285_s21, %s285_s21 }
  0x5b   : > { %p1537_p2 = scmp.ne.s32.totalorder %s285_s21, %s1536_s19  ;;  %p1545_p10 = scmp.lt.s32.totalorder %s1536_s19, %s1536_s19 }
  0x5d   : > { %p1539_p3 = pnand %p1537_p2, %p1741_p9  ;;  %p1546_p1 = por %p1545_p10, %p1544_p8 }
  0x5f   : > { %p1540_p6 = pneg %p1539_p3 }
  0x61   : > { %p1547_p11 = pnand %p1546_p1, %p1540_p6 }
  0x63   : > { %1550 = shalt.err (!%p1547_p11)
}
  0x64   : > { %1336 = dma.hbm_to_vmem [thread:$0]  (!%p1725_p7), %s1976_s6, 1024, %s285_s21, [#allocation8], %s1628_s16, %s1628_s16, %s1629_s18  }
  0x65   : > { %s1835_s25 = sadd.s32 1, %s1623_s30   ;;  %s30_s15 = sadd.s32 1, %s1619_s29 }
  0x66   : > { %s27_s20 = ssub.s32 %s1623_s30, %s1835_s25  ;;  %p37_p9 = scmp.ne.s32.totalorder %s1619_s29, %s1615_s28 }
  0x67   : > { %p28_p4 = scmp.eq.s32.totalorder %s27_s20, 0  ;;  %p38_p5 = scmp.eq.s32.totalorder %s1623_s30, 0 }
  0x68   : > { %p1345_p12 = scmp.lt.s32.totalorder %s1623_s30, 4  ;;  %s301_s22 = sand.u32 1, %s1619_s29  }
  0x69   : > { %s1846_s23 = scalar_select %p28_p4, %s1619_s29, %s30_s15  }
  0x6a   : > { %p39_p13 = por %p38_p5, %p37_p9  ;;  %s1303_s24 = smul.u32 24, %s301_s22 }
  0x6b   : > { %s1304_s26 = smul.u32 384, %s1623_s30  ;;  %s1860_s19 = scalar_lea.sflag [#allocation3], %s301_s22 }
  0x6c   : > { %p1849_p0 = pnand %p1345_p12, %p39_p13  ;;  %s305_s13 = scalar_lea.vmem [#allocation2], %s1303_s24 }
  0x6d   : > { %s1856_s21 = scalar_lea.hbm %s1970_s0, %s1304_s26  ;;  %s313_s14 = sshll.u32 %s305_s13, 4  ;;  %s1858_s14 = int_to_ptr.vmem [resolvable:$true] %s313_s14 }
  0x6e   : > { %s1551_s17 = scalar_lea.hbm %s1856_s21, 384  ;;  %p1553_p2 = pneg %p1849_p0 }
  0x6f   : > { %p1552_p7 = scmp.ne.s32.totalorder %s1856_s21, %s1551_s17  ;;  %s1556_s20 = scalar_lea.hbm %s1970_s0, 1536 }
  0x70   : > { %p1557_p8 = scmp.lt.u32.totalorder %s1856_s21, %s1970_s0  ;;  %p1558_p10 = scmp.lt.u32.totalorder %s1556_s20, %s1551_s17 }
  0x71   : > { %p1554_p3 = pnand %p1553_p2, %p1552_p7  ;;  %p1560_p11 = scmp.lt.u32.totalorder %s1551_s17, %s1856_s21 }
  0x72   : > { %p1559_p1 = por %p1558_p10, %p1557_p8 }
  0x73   : > { %p1555_p6 = pneg %p1554_p3 }
  0x74   : > { %p1561_p9 = por %p1560_p11, %p1559_p1 }
  0x76   : > { %p1562_p4 = pnand %p1561_p9, %p1555_p6 }
  0x78   : > { %1565 = shalt.err (!%p1562_p4)
}
  0x79   : > { %s1566_s22 = scalar_lea.vmem %s1858_s14, 384  ;;  %s1631_s24 = smov [#allocation2]  }
  0x7a   : > { %p1567_p5 = scmp.ne.s32.totalorder %s1858_s14, %s1566_s22  ;;  %s1571_s18 = sshll.u32 %s1631_s24, 4  ;;  %s1572_s18 = int_to_ptr.vmem [resolvable:$false] %s1571_s18 }
  0x7b   : > { %s1573_s13 = scalar_lea.vmem %s1572_s18, 768  ;;  %p1574_p7 = scmp.lt.s32.totalorder %s1858_s14, %s1572_s18 }
  0x7c   : > { %p1569_p12 = pnand %p1567_p5, %p1553_p2  ;;  %p1575_p3 = scmp.lt.s32.totalorder %s1573_s13, %s1566_s22 }
  0x7e   : > { %p1570_p13 = pneg %p1569_p12  ;;  %p1576_p8 = por %p1575_p3, %p1574_p7 }
  0x80   : > { %p1577_p10 = pnand %p1576_p8, %p1570_p13 }
  0x82   : > { %1580 = shalt.err (!%p1577_p10)
}
  0x83   : > { %s1632_s17 = smov 192   ;;  %s1633_s9 = smov 12  }
  0x84   : > { %1340 = dma.hbm_to_vmem [thread:$0]  (!%p1849_p0), %s1856_s21, 384, %s1858_s14, %s1860_s19, %s1632_s17, %s1632_s17, %s1633_s9  }
  0x85   : > { %p1990_p2 = scmp.ne.s32.totalorder %s1986_s12, 0 }
  0x86   : > { %s327_s15 = sand.u32 (!%p1990_p2), 1, %s1615_s28   ;;  %p1991_p6 = scmp.ne.s32.totalorder (!%p1990_p2), %s1985_s11, 0 }
  0x87   : > { %325 = sbr.rel (%p1990_p2) target bundleno = 1065 (0x429), region = 52  ;;  %s328_s26 = scalar_lea.sflag (!%p1990_p2), [#allocation3], %s327_s15 }
  0x88   : > { %s1305_s20 = smul.u32 (!%p1990_p2), 24, %s327_s15 }
  0x8a   : > { %s1891_s16 = scalar_lea.vmem (!%p1990_p2), [#allocation2], %s1305_s20 }
  0x8e   : > { %1598 = dma.done.wait (%p1991_p6), %s328_s26, 384  }
  0x8f   : > { %1600 = vsyncadd (%p1991_p6), %s328_s26, 4294966912  ;;  %p1992_p1 = scmp.ne.s32.totalorder %s1984_s10, 0 }
  0x91   : > { %1602 = dma.done.wait (%p1992_p1), [#allocation5], 3392  }
  0x92   : > { %1604 = vsyncadd (%p1992_p1), [#allocation5], 4294963904 }
  0x93   : > { %1606 = dma.done.wait (%p1992_p1), [#allocation8], 2048  }
  0x94   : > { %1608 = vsyncadd (%p1992_p1), [#allocation8], 4294965248  ;;  %v1634_v0 = vmov 0.0   ;;  %vm1635_vm0 = vmmov 0   ;;  %v1392_v1 = vld [vmem:[#allocation4 + $0x40] sm:$0xff]   ;;  %v1394_v3 = vld [vmem:[#allocation4 + $0x48] sm:$0xff]  }
  0x95   : > { %1233 = vmatprep.subr.bf16.mxu1 %v1634_v0  ;;  %1239 = vmatprep.mubr.msk.bf16.mxu1 %vm1635_vm0, %v1634_v0  ;;  %v1393_v2 = vld [vmem:[#allocation4] sm:$0xff]   ;;  %v1395_v4 = vld [vmem:[#allocation4 + $0x8] sm:$0xff]   ;;  %v1396_v5 = vld [vmem:[#allocation4 + $0x50] sm:$0xff]   ;;  %vm566_vm1 = vcmask 1041408   ;;  %vm562_vm2 = vcmask 293888   ;;  %s1993_s21 = sadd.s32 4294967295, %s1623_s30  }
  0x96   : > { %1180 = vmatprep.subr.bf16.mxu0 %v1392_v1  ;;  %v1397_v6 = vld [vmem:[#allocation4 + $0x10] sm:$0xff]   ;;  %v1398_v7 = vld [vmem:[#allocation4 + $0x58] sm:$0xff]   ;;  %v1400_v9 = vld [vmem:[#allocation4 + $0x60] sm:$0xff]   ;;  %s1126_s14 = sshll.u32 %s1993_s21, 1  ;;  %vm1002_vm9 = vcmask 23552  }
  0x97   : > { %1181 = vmatpush3.bf16.msra.mxu0 %v1393_v2  ;;  %v1399_v8 = vld [vmem:[#allocation4 + $0x18] sm:$0xff]   ;;  %v1404_v10 = vld [vmem:[#allocation4 + $0x80] sm:$0xff]   ;;  %v1407_v12 = vld [vmem:[#allocation4 + $0x88] sm:$0xff]   ;;  %p382_p0 = scmp.lt.s32.totalorder %s1126_s14, 7 }
  0x98   : > { %1182 = vmatprep.subr.bf16.mxu0 %v1394_v3  ;;  %v1401_v11 = vld [vmem:[#allocation4 + $0x20] sm:$0xff]   ;;  %1234 = vmatpush3.bf16.msra.mxu1 %v1404_v10  ;;  %v1402_v13 = vld [vmem:[#allocation4 + $0x68] sm:$0xff]   ;;  %v1405_v16 = vld [vmem:[#allocation4 + $0x70] sm:$0xff]  }
  0x99   : > { %1235 = vmatprep.subr.bf16.mxu1 %v1634_v0  ;;  %v1403_v14 = vld [vmem:[#allocation4 + $0x28] sm:$0xff]   ;;  %v1413_v17 = vld [vmem:[#allocation4 + $0x90] ss:$0 sps:$4 sm:$0x33]   ;;  %v1415_v21 = vld [vmem:[#allocation6] sm:$0xff]   ;;  %s1999_s14 = smov (!%p382_p0, %s1126_s14), 7 }
  0x9a   : > { %v1412_v15 = vld [vmem:[%s1891_s16 + $0x4] ss:$12 sps:$4 sm:$0xff]   ;;  %v1414_v18 = vld [vmem:[%s1891_s16 + $0x8] ss:$12 sps:$4 sm:$0xff]   ;;  %v568_v20 = vsel %vm566_vm1, %v1413_v17, 0  ;;  %s1127_s19 = sshll.u32 %s1999_s14, 3 }
  0x9b   : > { %1183 = vmatpush3.bf16.msra.mxu0 %v1395_v4  ;;  %602 = vmatprep.mubr.bf16.mxu0 %v1412_v15  ;;  %v1406_v19 = vld [vmem:[#allocation4 + $0x30] sm:$0xff]   ;;  %v1408_v22 = vld [vmem:[#allocation4 + $0x78] sm:$0xff]   ;;  %v1417_v26 = vld [vmem:[#allocation6 + $0x10] sm:$0xff]   ;;  %s385_s17 = scalar_lea.vmem %s1978_s8, %s1127_s19 }
  0x9c   : > { %1184 = vmatprep.subr.bf16.mxu0 %v1396_v5  ;;  %1236 = vmatpush3.bf16.msra.mxu1 %v1407_v12  ;;  %v1409_v23 = vld [vmem:[#allocation4 + $0x38] sm:$0xff]   ;;  %v1418_v27 = vld [vmem:[#allocation6 + $0x18] sm:$0xff]   ;;  %v1421_v30 = vld [vmem:[#allocation6 + $0x30] sm:$0xff]  }
  0x9d   : > { %1237 = vmatprep.subr.bf16.mxu1 %v1634_v0  ;;  %v1416_v24 = vld [vmem:[#allocation6 + $0x8] sm:$0xff]   ;;  %v1419_v28 = vld [vmem:[#allocation6 + $0x20] sm:$0xff]   ;;  %v1422_v31 = vld [vmem:[#allocation6 + $0x38] sm:$0xff]  }
  0x9e   : > { %v1410_v25 = vld [vmem:[%s1891_s16] ss:$12 sps:$4 sm:$0xff]  }
  0x9f   : > { %1185 = vmatpush3.bf16.msra.mxu0 %v1397_v6  ;;  %v1420_v29 = vld [vmem:[#allocation6 + $0x28] sm:$0xff]   ;;  %v1423_v32 = vld [vmem:[#allocation7] sm:$0xff]   ;;  %v1425_v34 = vld [vmem:[#allocation7 + $0x10] sm:$0xff]  }
  0xa0   : > { %1186 = vmatprep.subr.bf16.mxu0 %v1398_v7  ;;  %1238 = vmatpush3.bf16.msra.mxu1 %v568_v20  ;;  %v1424_v33 = vld [vmem:[#allocation7 + $0x8] sm:$0xff]   ;;  %v1426_v35 = vld [vmem:[#allocation7 + $0x18] sm:$0xff]   ;;  %v1427_v36 = vld [vmem:[#allocation7 + $0x20] sm:$0xff]  }
  0xa1   : > { %1243 = vmatprep.subr.bf16.mxu1 %v1634_v0  ;;  %v1428_v37 = vld [vmem:[#allocation7 + $0x28] sm:$0xff]   ;;  %v1128_v44 = vld [vmem:[%s1972_s2] ss:$0 sm:$0xff]  ;;  %v1429_v58 = vld [vmem:[#allocation7 + $0x30] sm:$0xff]  }
  0xa2   : > { %v1430_v59 = vld [vmem:[#allocation7 + $0x38] sm:$0xff]   ;;  %v1431_v60 = vld [vmem:[#allocation9] sm:$0xff]   ;;  %v1432_v61 = vld [vmem:[#allocation9 + $0x8] sm:$0xff]  }
  0xa3   : > { %1187 = vmatpush3.bf16.msra.mxu0 %v1399_v8  ;;  %1240 = vmatmul.mubr.msk.bf16.vlgmr.msra.gmra.mrb[0].mxu1 %vm562_vm2, %v1414_v18  ;;  %v1433_v62 = vld [vmem:[#allocation9 + $0x10] sm:$0xff]   ;;  %v1434_v63 = vld [vmem:[#allocation9 + $0x18] sm:$0xff]   ;;  %v1435_v1 = vld [vmem:[#allocation9 + $0x20] sm:$0xff]  }
  0xa4   : > { %1188 = vmatprep.subr.bf16.mxu0 %v1400_v9  ;;  %1244 = vmatpush3.bf16.msra.mxu1 %v1415_v21  ;;  %v1436_v2 = vld [vmem:[#allocation9 + $0x28] sm:$0xff]   ;;  %v1437_v12 = vld [vmem:[#allocation9 + $0x30] sm:$0xff]  }
  0xa5   : > { %1245 = vmatprep.subr.bf16.mxu1 %v1634_v0  ;;  %1259 = vmatprep.mubr.msk.bf16.mxu1 %vm1635_vm0, %v1634_v0 }
  0xa7   : > { %1189 = vmatpush3.bf16.msra.mxu0 %v1401_v11 }
  0xa8   : > { %1190 = vmatprep.subr.bf16.mxu0 %v1402_v13  ;;  %1246 = vmatpush3.bf16.msra.mxu1 %v1416_v24  ;;  %v1438_v13 = vld [vmem:[#allocation9 + $0x38] sm:$0xff]  }
  0xa9   : > { %1247 = vmatprep.subr.bf16.mxu1 %v1634_v0 }
  0xab   : > { %1191 = vmatpush3.bf16.msra.mxu0 %v1403_v14  ;;  %v1160_v14 = vld [vmem:[%s1975_s5] ss:$0 sm:$0xff] }
  0xac   : > { %1192 = vmatprep.subr.bf16.mxu0 %v1405_v16  ;;  %1248 = vmatpush3.bf16.msra.mxu1 %v1417_v26 }
  0xad   : > { %1249 = vmatprep.subr.bf16.mxu1 %v1634_v0 }
  0xaf   : > { %1193 = vmatpush3.bf16.msra.mxu0 %v1406_v19 }
  0xb0   : > { %1194 = vmatprep.subr.bf16.mxu0 %v1408_v22  ;;  %1250 = vmatpush3.bf16.msra.mxu1 %v1418_v27 }
  0xb1   : > { %1251 = vmatprep.subr.bf16.mxu1 %v1634_v0 }
  0xb3   : > { %1195 = vmatpush3.bf16.msra.mxu0 %v1409_v23 }
  0xb4   : > { %1263 = vmatprep.subr.bf16.mxu0 %v1634_v0  ;;  %1252 = vmatpush3.bf16.msra.mxu1 %v1419_v28 }
  0xb5   : > { %1253 = vmatprep.subr.bf16.mxu1 %v1634_v0 }
  0xb6   : > { %603 = vmatmul.mubr.bf16.vlgmr.msra.gmra.mrb[0].mxu0 %v1410_v25  ;;  %v1169_v25 = vld [vmem:[%s1977_s7] ss:$0 sm:$0xff] }
  0xb7   : > { %1279 = vmatprep.mubr.msk.bf16.mxu0 %vm1635_vm0, %v1634_v0  ;;  %1264 = vmatpush3.bf16.msra.mxu0 %v1423_v32 }
  0xb8   : > { %1254 = vmatpush3.bf16.msra.mxu1 %v1420_v29  ;;  %1265 = vmatprep.subr.bf16.mxu0 %v1634_v0 }
  0xb9   : > { %1255 = vmatprep.subr.bf16.mxu1 %v1634_v0 }
  0xbb   : > { %1266 = vmatpush3.bf16.msra.mxu0 %v1424_v33 }
  0xbc   : > { %1256 = vmatpush3.bf16.msra.mxu1 %v1421_v30  ;;  %1267 = vmatprep.subr.bf16.mxu0 %v1634_v0 }
  0xbd   : > { %1257 = vmatprep.subr.bf16.mxu1 %v1634_v0 }
  0xbf   : > { %1268 = vmatpush3.bf16.msra.mxu0 %v1425_v34 }
  0xc0   : > { %1258 = vmatpush3.bf16.msra.mxu1 %v1422_v31  ;;  %1269 = vmatprep.subr.bf16.mxu0 %v1634_v0 }
  0xc1   : > { %1283 = vmatprep.subr.bf16.mxu1 %v1634_v0 }
  0xc3   : > { %1270 = vmatpush3.bf16.msra.mxu0 %v1426_v35 }
  0xc4   : > { %1271 = vmatprep.subr.bf16.mxu0 %v1634_v0 }
  0xc7   : > { %1272 = vmatpush3.bf16.msra.mxu0 %v1427_v36 }
  0xc8   : > { %1273 = vmatprep.subr.bf16.mxu0 %v1634_v0 }
  0xcb   : > { %1274 = vmatpush3.bf16.msra.mxu0 %v1428_v37 }
  0xcc   : > { %1275 = vmatprep.subr.bf16.mxu0 %v1634_v0 }
  0xcf   : > { %1276 = vmatpush3.bf16.msra.mxu0 %v1429_v58 }
  0xd0   : > { %1277 = vmatprep.subr.bf16.mxu0 %v1634_v0 }
  0xd3   : > { %1278 = vmatpush3.bf16.msra.mxu0 %v1430_v59 }
 0x176   : > { %v645_v38 = vpop.f32.mrb[0].mxu1 }
 0x177   : > { %v1241_v39 = vpop.f32.mrb[1].mxu1 }
 0x178   : > { %v648_v40 = vpop.f32.mrb[2].mxu1 }
 0x179   : > { %v1242_v41 = vpop.f32.mrb[3].mxu1 }
 0x189   : > { %v1196_v42 = vpop.f32.mrb[0].mxu0 }
 0x18a   : > { %v1197_v43 = vpop.f32.mrb[1].mxu0 }
 0x18b   : > { %v1198_v45 = vadd.f32 %v1197_v43, %v1196_v42  ;;  %v1199_v46 = vpop.f32.mrb[2].mxu0 }
 0x18c   : > { %v1200_v47 = vpop.f32.mrb[3].mxu0 }
 0x18d   : > { %v605_v48 = vadd.f32 %v1198_v45, %v1128_v44  ;;  %v1201_v49 = vadd.f32 %v1200_v47, %v1199_v46 }
 0x18f   : > { %v646_v50 = vadd.f32 %v645_v38, %v605_v48  ;;  %v608_v51 = vadd.f32 %v1201_v49, %v1128_v44 }
 0x191   : > { %v654_v52 = vmul.f32 0.01, %v646_v50  ;;  %v649_v53 = vadd.f32 %v648_v40, %v608_v51  ;;  %vm652_vm3 = vcmp.ge.f32.partialorder %v646_v50, 0.0 }
 0x193   : > { %vm653_vm4 = vcmp.ge.f32.partialorder %v649_v53, 0.0  ;;  %v655_v54 = vmul.f32 0.01, %v649_v53  ;;  %v656_v55 = vsel %vm652_vm3, %v646_v50, %v654_v52 }
 0x195   : > { %v657_v56 = vsel %vm653_vm4, %v649_v53, %v655_v54 }
 0x196   : > { %v658_v57 = vpack.c.bf16 %v657_v56, %v656_v55 }
 0x198   : > { %1260 = vmatmul.mubr.bf16.vlgmr.msra.gmra.mrb[4].mxu1 %v658_v57 }
 0x199   : > { %1299 = vmatprep.mubr.msk.bf16.mxu1 %vm1635_vm0, %v1634_v0  ;;  %1284 = vmatpush3.bf16.msra.mxu1 %v1431_v60 }
 0x19a   : > { %1285 = vmatprep.subr.bf16.mxu1 %v1634_v0 }
 0x19d   : > { %1286 = vmatpush3.bf16.msra.mxu1 %v1432_v61 }
 0x19e   : > { %1287 = vmatprep.subr.bf16.mxu1 %v1634_v0 }
 0x1a1   : > { %1288 = vmatpush3.bf16.msra.mxu1 %v1433_v62 }
 0x1a2   : > { %1289 = vmatprep.subr.bf16.mxu1 %v1634_v0 }
 0x1a5   : > { %1290 = vmatpush3.bf16.msra.mxu1 %v1434_v63 }
 0x1a6   : > { %1291 = vmatprep.subr.bf16.mxu1 %v1634_v0 }
 0x1a9   : > { %1292 = vmatpush3.bf16.msra.mxu1 %v1435_v1 }
 0x1aa   : > { %1293 = vmatprep.subr.bf16.mxu1 %v1634_v0 }
 0x1ad   : > { %1294 = vmatpush3.bf16.msra.mxu1 %v1436_v2 }
 0x1ae   : > { %1295 = vmatprep.subr.bf16.mxu1 %v1634_v0 }
 0x1b1   : > { %1296 = vmatpush3.bf16.msra.mxu1 %v1437_v12 }
 0x1b2   : > { %1297 = vmatprep.subr.bf16.mxu1 %v1634_v0 }
 0x1b5   : > { %1298 = vmatpush3.bf16.msra.mxu1 %v1438_v13 }
 0x26b   : > { %v757_v3 = vpop.f32.mrb[4].mxu1 }
 0x26c   : > { %v766_v4 = vmul.f32 0.01, %v757_v3  ;;  %v1261_v5 = vpop.f32.mrb[5].mxu1  ;;  %vm764_vm5 = vcmp.ge.f32.partialorder %v757_v3, 0.0 }
 0x26d   : > { %v760_v6 = vpop.f32.mrb[6].mxu1 }
 0x26e   : > { %vm765_vm6 = vcmp.ge.f32.partialorder %v760_v6, 0.0  ;;  %v767_v7 = vmul.f32 0.01, %v760_v6  ;;  %v1262_v8 = vpop.f32.mrb[7].mxu1  ;;  %v768_v9 = vsel %vm764_vm5, %v757_v3, %v766_v4 }
 0x270   : > { %v769_v10 = vsel %vm765_vm6, %v760_v6, %v767_v7 }
 0x271   : > { %v770_v11 = vpack.c.bf16 %v769_v10, %v768_v9 }
 0x273   : > { %1280 = vmatmul.mubr.bf16.vlgmr.msra.gmra.mrb[4].mxu0 %v770_v11 }
 0x346   : > { %v876_v15 = vpop.f32.mrb[4].mxu0 }
 0x347   : > { %v877_v16 = vadd.f32 %v1160_v14, %v876_v15  ;;  %v1281_v17 = vpop.f32.mrb[5].mxu0 }
 0x348   : > { %v879_v18 = vpop.f32.mrb[6].mxu0 }
 0x349   : > { %v885_v19 = vmul.f32 0.01, %v877_v16  ;;  %v880_v20 = vadd.f32 %v1160_v14, %v879_v18  ;;  %v1282_v21 = vpop.f32.mrb[7].mxu0  ;;  %vm883_vm7 = vcmp.ge.f32.partialorder %v877_v16, 0.0 }
 0x34b   : > { %vm884_vm8 = vcmp.ge.f32.partialorder %v880_v20, 0.0  ;;  %v886_v22 = vmul.f32 0.01, %v880_v20  ;;  %v887_v23 = vsel %vm883_vm7, %v877_v16, %v885_v19 }
 0x34d   : > { %v888_v24 = vsel %vm884_vm8, %v880_v20, %v886_v22 }
 0x34e   : > { %v889_v0 = vpack.c.bf16 %v888_v24, %v887_v23 }
 0x350   : > { %1300 = vmatmul.mubr.bf16.vlgmr.msra.gmra.mrb[8].mxu1 %v889_v0 }
 0x423   : > { %v995_v26 = vpop.f32.mrb[8].mxu1 }
 0x424   : > { %v996_v27 = vadd.f32 %v1169_v25, %v995_v26  ;;  %v1301_v28 = vpop.f32.mrb[9].mxu1 }
 0x425   : > { %v998_v29 = vpop.f32.mrb[10].mxu1 }
 0x426   : > { %1003 = vst.msk [vmem:[%s385_s17] sm:$0xff] %vm1002_vm9, %v996_v27  ;;  %v999_v30 = vadd.f32 %v1169_v25, %v998_v29  ;;  %v1302_v31 = vpop.f32.mrb[11].mxu1 }
 0x428   : > { %1004 = vst.msk [vmem:[%s385_s17 + $0x8] sm:$0xff] %vm1002_vm9, %v999_v30 }
 0x429 PF: > { %p20_p11 = scmp.ge.s32.totalorder %s1835_s25, 6   ;;  %s1994_s27 = smov %s1615_s28 }
 0x42a   : > { %s1995_s28 = smov %s1619_s29  ;;  %s1996_s29 = smov %s1846_s23 }
 0x42b   : > { %s1997_s30 = smov %s1835_s25  ;;  %22 = sbr.rel (!%p20_p11) target bundleno = 5 (0x5), region = 108 }
 0x432   :  { %1027 = vsyncpa [#allocation3], 1 }
 0x433   :  { %1029 = vsyncpa [#allocation3 + $0x1], 1 }
 0x434   :  { %1030 = vsyncpa [#allocation5], 1 }
 0x435   :  { %1031 = vsyncpa [#allocation8], 1 }

</bundles_post_ra>
